<compile_context>
chip_gen: v7x
topology: tpu7x:2x2x1
jax: 0.10.0
libtpu: 0.0.40
codegen_flags: <defaults>
</compile_context>

<pallas_src>
import functools
import math

import numpy as np
import jax
import jax.numpy as jnp
from jax.experimental import pallas as pl
from jax.experimental.pallas import tpu as pltpu


# ---------------------------------------------------------------------------
# init-time geometry (pure numpy; mirrors the PyTorch __init__ exactly)
# ---------------------------------------------------------------------------
def _rodrigues(rvec):
    """cv2.Rodrigues for a rotation vector -> rotation matrix."""
    r = np.asarray(rvec, np.float64)
    theta = np.linalg.norm(r)
    if theta < 1e-12:
        return np.eye(3, dtype=np.float32)
    k = r / theta
    K = np.array([[0.0, -k[2], k[1]],
                  [k[2], 0.0, -k[0]],
                  [-k[1], k[0], 0.0]], np.float64)
    R = np.eye(3) + math.sin(theta) * K + (1.0 - math.cos(theta)) * (K @ K)
    return R.astype(np.float32)


def _get_cube_grids(cube_dim, FoV_deg=90.0):
    """6 grids, each (cube_dim, cube_dim, 2) with (lon, lat) in [-1, 1]."""
    FoV = FoV_deg / 180.0 * np.pi
    r_lst = np.array([[0, -180.0, 0], [90.0, 0, 0], [0, 0, 0],
                      [0, 90, 0], [0, -90, 0], [-90, 0, 0]],
                     np.float32) / 180.0 * np.pi
    R_lst = [_rodrigues(x) for x in r_lst]

    f = 0.5 * cube_dim / np.tan(0.5 * FoV)
    cx = (cube_dim - 1) / 2.0
    cy = cx
    x = np.tile(np.arange(cube_dim)[None, ..., None], [cube_dim, 1, 1])
    y = np.tile(np.arange(cube_dim)[..., None, None], [1, cube_dim, 1])
    ones = np.ones_like(x)
    xyz = np.concatenate([x, y, ones], axis=-1).astype(np.float64)
    K = np.array([[f, 0, cx], [0, f, cy], [0, 0, 1]], np.float32)
    xyz = xyz @ np.linalg.inv(K).T
    xyz /= np.linalg.norm(xyz, axis=-1, keepdims=True)

    grids = []
    for R in R_lst:
        tmp = xyz @ R
        lon = np.arctan2(tmp[..., 0:1], tmp[..., 2:]) / np.pi
        lat = np.arcsin(tmp[..., 1:2]) / (0.5 * np.pi)
        grids.append(np.concatenate([lon, lat], axis=-1).astype(np.float32))
    return grids


def _build_sampling_matrices(grids, equ_h, equ_w):
    """Bilinear sampling matrices, one per face: (6, Q=H*W, P=cd*cd) float32.

    Note: the longitude seam is NOT wrapped (out-of-range taps are zero-padded),
    which matches torch grid_sample(padding_mode='zeros') exactly.
    """
    H, W = equ_h, equ_w
    mats = []
    for g in grids:
        cd = g.shape[0]
        P = cd * cd
        ix = (g[..., 0].reshape(-1) + 1.0) * 0.5 * (W - 1)   # align_corners=True
        iy = (g[..., 1].reshape(-1) + 1.0) * 0.5 * (H - 1)
        x0 = np.floor(ix).astype(np.int64)
        y0 = np.floor(iy).astype(np.int64)
        x1 = x0 + 1
        y1 = y0 + 1
        fx = ix - x0
        fy = iy - y0
        S = np.zeros((P, H * W), np.float32)
        rows = np.arange(P)
        for xx, yy, ww in [(x0, y0, (1 - fx) * (1 - fy)),
                           (x1, y0, fx * (1 - fy)),
                           (x0, y1, (1 - fx) * fy),
                           (x1, y1, fx * fy)]:
            valid = (xx >= 0) & (xx < W) & (yy >= 0) & (yy < H)   # zeros padding
            xxc = np.clip(xx, 0, W - 1)
            yyc = np.clip(yy, 0, H - 1)
            np.add.at(S, (rows, yyc * W + xxc), (ww * valid).astype(np.float32))
        mats.append(S.T)            # (Q, P): ready for x_flat @ S
    return np.stack(mats, axis=0)   # (6, Q, P)


def _band_metadata(S, tk, tn):
    """Per-(face, n-tile) first K-block and #K-blocks of the non-zero band."""
    _, Q, P = S.shape
    n_blocks = P // tn
    kb_start = np.zeros((6, n_blocks), np.int32)
    kb_len = np.zeros((6, n_blocks), np.int32)
    for f in range(6):
        for n in range(n_blocks):
            cols = S[f][:, n * tn:(n + 1) * tn]
            nz = np.nonzero(np.abs(cols).sum(axis=1) > 0)[0]
            b0 = int(nz.min()) // tk
            b1 = int(nz.max()) // tk
            kb_start[f, n] = b0
            kb_len[f, n] = b1 - b0 + 1
    # flattened row-major: tile index = f * n_blocks + n
    return kb_start.reshape(-1), kb_len.reshape(-1)


def _pick_tile(full, target, granule=128):
    """Largest tile <= target that divides `full` and is a multiple of `granule`;
    falls back to the full dim (allowed when the block spans the whole axis)."""
    if full <= target:
        return full
    t = (target // granule) * granule
    while t >= granule:
        if full % t == 0:
            return t
        t -= granule
    return full


# Sampling tables cached per configuration (built once, uploaded once).
_TABLE_CACHE = {}


def _get_tables(cube_dim, equ_h, FoV, tk, tn):
    key = (int(cube_dim), int(equ_h), float(FoV), int(tk), int(tn))
    if key not in _TABLE_CACHE:
        grids = _get_cube_grids(cube_dim, FoV)
        S_np = _build_sampling_matrices(grids, equ_h, equ_h * 2)   # (6, Q, P)
        kb_start, kb_len = _band_metadata(S_np, tk, tn)
        _TABLE_CACHE[key] = (
            jnp.asarray(S_np).astype(jnp.bfloat16),   # dominant HBM stream: bf16
            jnp.asarray(kb_start),                    # int32, SMEM scalar prefetch
            jnp.asarray(kb_len),
            int(kb_len.max()),
        )
    return _TABLE_CACHE[key]


# ---------------------------------------------------------------------------
# Pallas kernel: banded, tiled matmul with f32 VMEM accumulator
# ---------------------------------------------------------------------------
def _e2c_kernel(kb_start_ref, kb_len_ref, x_ref, s_ref, o_ref, acc_ref,
                *, B, C, n_blocks):
    f = pl.program_id(0)
    n = pl.program_id(1)
    k = pl.program_id(2)
    tile = f * n_blocks + n

    @pl.when(k == 0)
    def _init():
        acc_ref[...] = jnp.zeros_like(acc_ref)

    # Skip MXU work on K steps past this tile's latitude band.  The BlockSpec
    # index_map clamps the block index to the band end, so these steps also
    # issue no new DMA traffic.
    @pl.when(k < kb_len_ref[tile])
    def _accum():
        acc_ref[...] += jnp.dot(x_ref[...], s_ref[0],
                                preferred_element_type=jnp.float32)

    @pl.when(k == pl.num_programs(2) - 1)
    def _store():
        # (B*C, tn) accumulator -> (B, C, tn) output block (face dim squeezed).
        for b in range(B):
            o_ref[b] = acc_ref[pl.ds(b * C, C), :].astype(o_ref.dtype)


def equirec2cube(batch, cube_dim, equ_h, FoV=90.0, *, tile_k=512, tile_n=512):
    """batch: (B, C, equ_h, 2*equ_h) -> (6*B, C, cube_dim, cube_dim) float32.

    Matches torch Equirec2Cube.forward(batch, mode='bilinear') ordering:
    [img0_face0..face5, img1_face0..face5, ...].
    """
    B, C, h, w = batch.shape
    equ_w = equ_h * 2
    assert h == equ_h and w == equ_w

    Q = equ_h * equ_w
    P = cube_dim * cube_dim
    BC = B * C

    tk = _pick_tile(Q, tile_k)    # multiple of 128 (x's last block dim) or full Q
    tn = _pick_tile(P, tile_n)    # multiple of 128 (lane-dense output) or full P
    n_blocks = P // tn

    S_bf16, kb_start, kb_len, k_max = _get_tables(cube_dim, equ_h, FoV, tk, tn)

    # bf16 streams halve the HBM bytes of both operands; accumulation stays f32.
    # TODO(synk): if this ever becomes MXU-bound, pad/stack the tiny M=B*C dim.
    x_flat = batch.reshape(BC, Q).astype(jnp.bfloat16)

    def k_eff(f, n, k, ks, kl):
        t = f * n_blocks + n
        # clamp inside the band: repeated block index => no redundant DMA
        return ks[t] + jnp.minimum(k, kl[t] - 1)

    x_spec = pl.BlockSpec((BC, tk),
                          lambda f, n, k, ks, kl: (0, k_eff(f, n, k, ks, kl)))
    s_spec = pl.BlockSpec((1, tk, tn),
                          lambda f, n, k, ks, kl: (f, k_eff(f, n, k, ks, kl), n))
    # Output written directly in (B, 6, C, P) order -> torch ordering is a free
    # contiguous reshape afterwards (no post-kernel transpose through HBM).
    o_spec = pl.BlockSpec((B, None, C, tn),
                          lambda f, n, k, ks, kl: (0, f, 0, n))

    # Raise the scoped-VMEM limit (v5e/v6e defaults are small) but stay safely
    # below physical capacity (v7x has only 64 MiB per TensorCore).
    try:
        vmem_limit = min(64 * 1024 * 1024,
                         int(pltpu.get_tpu_info().vmem_capacity_bytes) * 3 // 4)
    except Exception:
        vmem_limit = 64 * 1024 * 1024

    out = pl.pallas_call(
        functools.partial(_e2c_kernel, B=B, C=C, n_blocks=n_blocks),
        out_shape=jax.ShapeDtypeStruct((B, 6, C, P), jnp.float32),
        grid_spec=pltpu.PrefetchScalarGridSpec(
            num_scalar_prefetch=2,                 # kb_start, kb_len -> SMEM
            grid=(6, n_blocks, k_max),             # K innermost (reduction axis)
            in_specs=[x_spec, s_spec],
            out_specs=o_spec,
            scratch_shapes=[pltpu.VMEM((BC, tn), jnp.float32)],
        ),
        compiler_params=pltpu.CompilerParams(
            dimension_semantics=("parallel", "parallel", "arbitrary"),
            vmem_limit_bytes=vmem_limit,
        ),
    )(kb_start, kb_len, x_flat, S_bf16)

    # (B, 6, C, P) -> (6*B, C, cd, cd); already in the torch output order.
    return out.reshape(B * 6, C, cube_dim, cube_dim)


if __name__ == "__main__":
    B, C = 2, 4
    equ_h = 16
    equ_w = equ_h * 2
    cube_dim = 8

    key = jax.random.PRNGKey(0)
    x = jax.random.normal(key, (B, C, equ_h, equ_w), dtype=jnp.float32)

    # small tiles so the toy size exercises multi-block K and the band metadata
    out = equirec2cube(x, cube_dim, equ_h, tile_k=128, tile_n=128)
    out = jax.block_until_ready(out)
    assert out.shape == (6 * B, C, cube_dim, cube_dim)

    # ---- references -------------------------------------------------------
    Q = equ_h * equ_w
    P = cube_dim * cube_dim
    grids = _get_cube_grids(cube_dim)
    S_np = _build_sampling_matrices(grids, equ_h, equ_w)        # (6, Q, P) f32

    def to_torch_order(r):                                      # (6, B*C, P) -> torch
        r = r.reshape(6, B, C, cube_dim, cube_dim)
        return np.transpose(r, (1, 0, 2, 3, 4)).reshape(6 * B, C, cube_dim, cube_dim)

    out_np = np.asarray(out, np.float64)

    # (a) tight check against a reference built from the SAME bf16-rounded
    #     operands (validates the banded/tiled kernel mechanics).
    x_bf = np.asarray(jnp.asarray(x, jnp.float32).astype(jnp.bfloat16)
                      .astype(jnp.float32), np.float64).reshape(B * C, Q)
    S_bf = np.asarray(jnp.asarray(S_np).astype(jnp.bfloat16)
                      .astype(jnp.float32), np.float64)
    ref_bf = np.einsum("nq,fqp->fnp", x_bf, S_bf)
    np.testing.assert_allclose(out_np, to_torch_order(ref_bf), rtol=1e-4, atol=1e-4)

    # (b) loose check against the exact float32 grid_sample semantics
    #     (difference = bf16 streaming of x and the bilinear weights).
    x_np = np.asarray(x, np.float64).reshape(B * C, Q)
    ref_f32 = np.einsum("nq,fqp->fnp", x_np, S_np.astype(np.float64))
    np.testing.assert_allclose(out_np, to_torch_order(ref_f32), rtol=5e-2, atol=5e-2)

    print("KERNEL_OK")
</pallas_src>

<mosaic_0001>
module attributes {stable_mosaic.version = 11 : i64} {
  func.func @_e2c_kernel(%arg0: i32, %arg1: i32, %arg2: i32, %arg3: memref<6xi32, #tpu.memory_space<smem>>, %arg4: memref<6xi32, #tpu.memory_space<smem>>, %arg5: memref<8x128xbf16, #tpu.memory_space<vmem>>, %arg6: memref<1x128x64xbf16, #tpu.memory_space<vmem>>, %arg7: memref<2x1x4x64xf32, #tpu.memory_space<vmem>>, %arg8: memref<8x64xf32, #tpu.memory_space<vmem>>) attributes {dimension_semantics = [#tpu.dimension_semantics<parallel>, #tpu.dimension_semantics<parallel>, #tpu.dimension_semantics<arbitrary>], iteration_bounds = array<i64: 6, 1, 2>, scalar_prefetch = 2 : i64, scratch_operands = 1 : i64, tpu.core_type = #tpu.core_type<tc>, window_params = [{transform_indices = @transform_0, window_bounds = array<i64: 8, 128>}, {transform_indices = @transform_1, window_bounds = array<i64: 1, 128, 64>}, {transform_indices = @transform_2, window_bounds = array<i64: 2, 1, 4, 64>}]} {
    %c1_i32 = arith.constant 1 : i32
    %0 = arith.muli %arg0, %c1_i32 : i32
    %1 = arith.addi %0, %arg1 : i32
    %c0_i32 = arith.constant 0 : i32
    %2 = arith.cmpi eq, %arg2, %c0_i32 : i32
    %3 = arith.extui %2 : i1 to i32
    %c0_i32_0 = arith.constant 0 : i32
    %4 = arith.cmpi ne, %3, %c0_i32_0 : i32
    scf.if %4 {
      %cst = arith.constant 0.000000e+00 : f32
      %13 = vector.broadcast %cst : f32 to vector<8x64xf32>
      %c0 = arith.constant 0 : index
      %c0_4 = arith.constant 0 : index
      %14 = vector.load %arg8[%c0, %c0_4] : memref<8x64xf32, #tpu.memory_space<vmem>>, vector<8x64xf32>
      tpu.vector_store %arg8[%c0, %c0_4], %13 {strides = array<i32>} : memref<8x64xf32, #tpu.memory_space<vmem>>, vector<8x64xf32>,
    } else {
    }
    %5 = arith.index_cast %1 : i32 to index
    %6 = memref.load %arg4[%5] : memref<6xi32, #tpu.memory_space<smem>>
    %7 = arith.cmpi slt, %arg2, %6 : i32
    %8 = arith.extui %7 : i1 to i32
    %c0_i32_1 = arith.constant 0 : i32
    %9 = arith.cmpi ne, %8, %c0_i32_1 : i32
    scf.if %9 {
      %c0 = arith.constant 0 : index
      %c0_4 = arith.constant 0 : index
      %13 = vector.load %arg8[%c0, %c0_4] : memref<8x64xf32, #tpu.memory_space<vmem>>, vector<8x64xf32>
      %c0_5 = arith.constant 0 : index
      %c0_6 = arith.constant 0 : index
      %14 = vector.load %arg5[%c0_5, %c0_6] : memref<8x128xbf16, #tpu.memory_space<vmem>>, vector<8x128xbf16>
      %c0_7 = arith.constant 0 : index
      %c0_8 = arith.constant 0 : index
      %c0_9 = arith.constant 0 : index
      %15 = vector.load %arg6[%c0_7, %c0_8, %c0_9] : memref<1x128x64xbf16, #tpu.memory_space<vmem>>, vector<1x128x64xbf16>
      %16 = vector.shape_cast %15 : vector<1x128x64xbf16> to vector<128x64xbf16>
      %cst = arith.constant dense<0.000000e+00> : vector<8x64xf32>
      %17 = tpu.matmul %14, %16, %cst {dimension_numbers = #tpu.dot_dimension_numbers<[1], [0], [0], [1], [0, 0, 1, 1], [], []>} : vector<8x128xbf16>, vector<128x64xbf16>, vector<8x64xf32> -> vector<8x64xf32>
      %18 = arith.addf %13, %17 : vector<8x64xf32>
      %c0_10 = arith.constant 0 : index
      %c0_11 = arith.constant 0 : index
      %19 = vector.load %arg8[%c0_10, %c0_11] : memref<8x64xf32, #tpu.memory_space<vmem>>, vector<8x64xf32>
      tpu.vector_store %arg8[%c0_10, %c0_11], %18 {strides = array<i32>} : memref<8x64xf32, #tpu.memory_space<vmem>>, vector<8x64xf32>,
    } else {
    }
    %c1_i32_2 = arith.constant 1 : i32
    %10 = arith.cmpi eq, %arg2, %c1_i32_2 : i32
    %11 = arith.extui %10 : i1 to i32
    %c0_i32_3 = arith.constant 0 : i32
    %12 = arith.cmpi ne, %11, %c0_i32_3 : i32
    scf.if %12 {
      %c0 = arith.constant 0 : index
      %c0_4 = arith.constant 0 : index
      %13 = vector.load %arg8[%c0, %c0_4] : memref<8x64xf32, #tpu.memory_space<vmem>>, vector<4x64xf32>
      %c0_5 = arith.constant 0 : index
      %c0_6 = arith.constant 0 : index
      %c0_7 = arith.constant 0 : index
      %c0_8 = arith.constant 0 : index
      %14 = vector.load %arg7[%c0_5, %c0_6, %c0_7, %c0_8] : memref<2x1x4x64xf32, #tpu.memory_space<vmem>>, vector<1x1x4x64xf32>
      %15 = vector.shape_cast %14 : vector<1x1x4x64xf32> to vector<4x64xf32>
      %16 = vector.shape_cast %13 : vector<4x64xf32> to vector<1x1x4x64xf32>
      tpu.vector_store %arg7[%c0_5, %c0_6, %c0_7, %c0_8], %16 {strides = array<i32>} : memref<2x1x4x64xf32, #tpu.memory_space<vmem>>, vector<1x1x4x64xf32>,
      %c4 = arith.constant 4 : index
      %c0_9 = arith.constant 0 : index
      %17 = vector.load %arg8[%c4, %c0_9] : memref<8x64xf32, #tpu.memory_space<vmem>>, vector<4x64xf32>
      %c1 = arith.constant 1 : index
      %c0_10 = arith.constant 0 : index
      %c0_11 = arith.constant 0 : index
      %c0_12 = arith.constant 0 : index
      %18 = vector.load %arg7[%c1, %c0_10, %c0_11, %c0_12] : memref<2x1x4x64xf32, #tpu.memory_space<vmem>>, vector<1x1x4x64xf32>
      %19 = vector.shape_cast %18 : vector<1x1x4x64xf32> to vector<4x64xf32>
      %20 = vector.shape_cast %17 : vector<4x64xf32> to vector<1x1x4x64xf32>
      tpu.vector_store %arg7[%c1, %c0_10, %c0_11, %c0_12], %20 {strides = array<i32>} : memref<2x1x4x64xf32, #tpu.memory_space<vmem>>, vector<1x1x4x64xf32>,
    } else {
    }
    return
  }
  func.func @transform_0(%arg0: i32, %arg1: i32, %arg2: i32, %arg3: memref<6xi32, #tpu.memory_space<smem>>, %arg4: memref<6xi32, #tpu.memory_space<smem>>) -> (i32, i32) {
    %c1_i32 = arith.constant 1 : i32
    %0 = arith.muli %arg0, %c1_i32 : i32
    %1 = arith.addi %0, %arg1 : i32
    %2 = arith.index_cast %1 : i32 to index
    %3 = memref.load %arg3[%2] : memref<6xi32, #tpu.memory_space<smem>>
    %4 = arith.index_cast %1 : i32 to index
    %5 = memref.load %arg4[%4] : memref<6xi32, #tpu.memory_space<smem>>
    %c1_i32_0 = arith.constant 1 : i32
    %6 = arith.subi %5, %c1_i32_0 : i32
    %7 = arith.minsi %arg2, %6 : i32
    %8 = arith.addi %3, %7 : i32
    %c0_i32 = arith.constant 0 : i32
    %c0_i32_1 = arith.constant 0 : i32
    return %c0_i32, %8 : i32, i32
  }
  func.func @transform_1(%arg0: i32, %arg1: i32, %arg2: i32, %arg3: memref<6xi32, #tpu.memory_space<smem>>, %arg4: memref<6xi32, #tpu.memory_space<smem>>) -> (i32, i32, i32) {
    %c1_i32 = arith.constant 1 : i32
    %0 = arith.muli %arg0, %c1_i32 : i32
    %1 = arith.addi %0, %arg1 : i32
    %2 = arith.index_cast %1 : i32 to index
    %3 = memref.load %arg3[%2] : memref<6xi32, #tpu.memory_space<smem>>
    %4 = arith.index_cast %1 : i32 to index
    %5 = memref.load %arg4[%4] : memref<6xi32, #tpu.memory_space<smem>>
    %c1_i32_0 = arith.constant 1 : i32
    %6 = arith.subi %5, %c1_i32_0 : i32
    %7 = arith.minsi %arg2, %6 : i32
    %8 = arith.addi %3, %7 : i32
    %c0_i32 = arith.constant 0 : i32
    return %arg0, %8, %arg1 : i32, i32, i32
  }
  func.func @transform_2(%arg0: i32, %arg1: i32, %arg2: i32, %arg3: memref<6xi32, #tpu.memory_space<smem>>, %arg4: memref<6xi32, #tpu.memory_space<smem>>) -> (i32, i32, i32, i32) {
    %c0_i32 = arith.constant 0 : i32
    %c0_i32_0 = arith.constant 0 : i32
    %c0_i32_1 = arith.constant 0 : i32
    return %c0_i32, %arg0, %c0_i32_0, %arg1 : i32, i32, i32, i32
  }
}

</mosaic_0001>

<bundles_post_ra>
// kernel: tpu_custom_call.1
= control target key start
LH: loop header
LB: loop body
LE: loop exit
PB: predicated region body
PF: predicated region fallthrough
CT: control target
= control target key end

     0   :  { %s1513_s0 = inlined_call_operand.hbm [shape: s32[6], index: 0, kind: input, shape index: {}]   ;;  %s1514_s2 = inlined_call_operand.hbm [shape: bf16[8,512], index: 2, kind: input, shape index: {}]   ;;  %s1515_s3 = inlined_call_operand.hbm [shape: bf16[6,512,64], index: 3, kind: input, shape index: {}]   ;;  %s1516_s4 = inlined_call_operand.hbm [shape: f32[2,6,4,64], index: 4, kind: output, shape index: {}]   ;;  %s1517_s1 = inlined_call_operand.hbm [shape: s32[6], index: 1, kind: input, shape index: {}]  }
   0x1   :  { %1532 = sst [smem:[#allocation35_spill]] %s1514_s2  ;;  %s785_s17 = scalar_lea.hbm %s1513_s0, 16 }
   0x2   :  { %1533 = sst [smem:[#allocation36_spill]] %s1516_s4  ;;  %p786_p0 = scmp.ne.s32.totalorder %s1513_s0, %s785_s17 }
   0x3   :  { %p789_p1 = scmp.lt.u32.totalorder %s785_s17, %s1513_s0 }
   0x5   :  { %p791_p2 = pnand %p789_p1, %p786_p0 }
   0x7   :  { %794 = shalt.err (!%p791_p2)  }
   0x8   :  { %s1019_s22 = smov [#allocation4]   ;;  %s795_s27 = scalar_lea.hbm %s1517_s1, 16 }
   0x9   :  { %10 = dma.hbm_to_smem %s1513_s0, 16, %s1019_s22, [#allocation3] }
   0xa   :  { %p796_p3 = scmp.ne.s32.totalorder %s1517_s1, %s795_s27  ;;  %p799_p4 = scmp.lt.u32.totalorder %s795_s27, %s1517_s1 }
   0xc   :  { %p801_p5 = pnand %p799_p4, %p796_p3 }
   0xe   :  { %804 = shalt.err (!%p801_p5)  }
   0xf   :  { %s1020_s6 = smov [#allocation5]  }
  0x10   :  { %12 = dma.hbm_to_smem %s1517_s1, 16, %s1020_s6, [#allocation3] }
  0x11   :  { %949 = dma.done.wait [#allocation3], 32 }
  0x12   :  { %950 = vsyncadd [#allocation3], 4294967264 }
  0x13   :  { %14 = sfence }
  0x14   :  { %15 = vsyncpa [#allocation7], 0 }
  0x15   :  { %17 = vsyncpa [#allocation7 + $0x1], 0 }
  0x16   :  { %18 = vsyncpa [#allocation10], 0 }
  0x17   :  { %20 = vsyncpa [#allocation10 + $0x1], 0 }
  0x18   :  { %21 = vsyncpa [#allocation8], 0 }
  0x19   :  { %23 = vsyncpa [#allocation8 + $0x1], 0  ;;  %s1081_s0 = smov 0   ;;  %s1083_s9 = smov 0  }
  0x1a   :  { %s1085_s10 = smov 0   ;;  %s1087_s11 = smov 0  }
  0x1b   :  { %s1089_s12 = smov 0   ;;  %s1091_s1 = smov 0  }
  0x1c   :  { %s1093_s13 = smov 0   ;;  %s1095_s14 = smov 0  }
  0x1d   :  { %s1097_s15 = smov 0   ;;  %s1099_s16 = smov 0  }
  0x1e   :  { %s1101_s17 = smov 0   ;;  %s1103_s18 = smov 0  }
  0x1f   :  { %s1105_s19 = smov 0   ;;  %s1107_s20 = smov 0  }
  0x20 LB: > { %1534 = sst [smem:[#allocation24_spill]] %s973_s10  ;;  %s1518_s21 = sadd.s32 4294967295, %s1017_s20   ;;  %s1017_s20 = sphi %s1107_s20, %s29_s20   ;;  %s1013_s19 = sphi %s1105_s19, %s1592_s19   ;;  %s1009_s18 = sphi %s1103_s18, %s1591_s18   ;;  %s1005_s17 = sphi %s1101_s17, %s1590_s17   ;;  %s1001_s16 = sphi %s1099_s16, %s1589_s16   ;;  %s997_s15 = sphi %s1097_s15, %s1580_s15   ;;  %s993_s14 = sphi %s1095_s14, %s1588_s14   ;;  %s989_s13 = sphi %s1093_s13, %s1587_s13   ;;  %s985_s1 = sphi %s1091_s1, %s1578_s1   ;;  %s981_s12 = sphi %s1089_s12, %s1586_s12   ;;  %s977_s11 = sphi %s1087_s11, %s1585_s11   ;;  %s973_s10 = sphi %s1085_s10, %s1576_s10   ;;  %s969_s9 = sphi %s1083_s9, %s1584_s9   ;;  %s965_s0 = sphi %s1081_s0, %s1583_s0  }
  0x21   : > { %1535 = sst [smem:[#allocation25_spill]] %s985_s1  ;;  %s41_s22 = sadd.s32 1, %s1009_s18 }
  0x22   : > { %1536 = sst [smem:[#allocation26_spill]] %s997_s15  ;;  %p42_p6 = scmp.ge.s32.totalorder %s41_s22, 2 }
  0x23   : > { %1537 = sst [smem:[#allocation27_spill]] %s1001_s16  ;;  %s48_s23 = sadd.s32 1, %s1013_s19 }
  0x24   : > { %1538 = sst [smem:[#allocation28_spill]] %s1005_s17  ;;  %s1594_s22 = smov (%p42_p6, %s41_s22), 0 }
  0x25   : > { %s54_s25 = sld [smem:[#allocation5 + %s1013_s19]]  ;;  %s1596_s23 = smov (!%p42_p6, %s48_s23), %s1013_s19 }
  0x26   : > { %1539 = sst [smem:[#allocation29_spill]] %s1594_s22  ;;  %p76_p7 = scmp.ne.s32.totalorder %s997_s15, %s993_s14 }
  0x27   : > { %s1158_s26 = sld [smem:[#allocation4 + %s1013_s19]]  ;;  %p50_p8 = scmp.ge.s32.totalorder %s1596_s23, 6 }
  0x28   : > { %p82_p9 = scmp.ne.s32.totalorder %s993_s14, %s989_s13  ;;  %p77_p10 = scmp.eq.s32.totalorder %s1017_s20, 0 }
  0x29   : > { %p1166_p11 = scmp.eq.s32.totalorder %s1518_s21, 0  ;;  %s1598_s23 = smov (%p50_p8, %s1596_s23), 0 }
  0x2a   : > { %1541 = sst [smem:[#allocation30_spill]] %s1598_s23  ;;  %s69_s30 = sadd.s32 1, %s997_s15 }
  0x2b   : > { %s557_s28 = sadd.s32 4294967295, %s54_s25  ;;  %p1174_p12 = por %p1166_p11, %p82_p9 }
  0x2c   : > { %p56_p13 = scmp.lt.s32.totalorder %s1009_s18, %s557_s28  ;;  %s61_s5 = sld [smem:[#allocation5 + %s1598_s23]] }
  0x2d   : > { %s1542_s29 = scalar_select %p1174_p12, 1, 0 }
  0x2e   : > { %p1183_p0 = por %p77_p10, %p76_p7  ;;  %s60_s8 = sld [smem:[#allocation4 + %s1598_s23]] }
  0x2f   : > { %1543 = sst [smem:[#allocation31_spill]] %s1542_s29  ;;  %s1197_s4 = ssub.s32 %s1013_s19, %s1598_s23 }
  0x30   : > { %s57_s7 = scalar_select %p56_p13, %s1009_s18, %s557_s28 }
  0x31   : > { %s94_s13 = sld [smem:[#allocation5 + %s1013_s19]]  ;;  %p126_p1 = scmp.ne.s32.totalorder %s981_s12, %s977_s11 }
  0x32   : > { %s1191_s25 = sld [smem:[#allocation4 + %s1013_s19]]  ;;  %s58_s17 = sadd.s32 %s57_s7, %s1158_s26 }
  0x33   : > { %s101_s24 = sld [smem:[#allocation5 + %s1598_s23]]  ;;  %s558_s16 = sadd.s32 4294967295, %s61_s5 }
  0x34   : > { %s100_s21 = sld [smem:[#allocation4 + %s1598_s23]]  ;;  %p63_p2 = scmp.lt.s32.totalorder %s1594_s22, %s558_s16 }
  0x35   : > { %p139_p3 = scmp.eq.s32.totalorder %s1197_s4, 0  ;;  %p1207_p4 = por %p126_p1, %p1166_p11 }
  0x36   : > { %s64_s26 = scalar_select %p63_p2, %s1594_s22, %s558_s16 }
  0x37   : > { %s559_s29 = sadd.s32 4294967295, %s94_s13  ;;  %s141_s28 = sadd.s32 1, %s973_s10 }
  0x38   : > { %s1545_s23 = scalar_select %p1207_p4, 1, 0 }
  0x39   : > { %p96_p5 = scmp.lt.s32.totalorder %s1009_s18, %s559_s29  ;;  %s560_s11 = sadd.s32 4294967295, %s101_s24 }
  0x3a   : > { %s65_s5 = sadd.s32 %s64_s26, %s60_s8  ;;  %p103_p6 = scmp.lt.s32.totalorder %s1594_s22, %s560_s11 }
  0x3b   : > { %s66_s7 = ssub.s32 %s58_s17, %s65_s5  ;;  %p151_p8 = scmp.ne.s32.totalorder %s973_s10, %s969_s9 }
  0x3c   : > { %p67_p7 = scmp.eq.s32.totalorder %s66_s7, 0  ;;  %s1547_s24 = sadd.s32 4294967295, %s1017_s20  }
  0x3d   : > { %s97_s27 = scalar_select %p96_p5, %s1009_s18, %s559_s29 }
  0x3e   : > { %s1219_s13 = scalar_select %p67_p7, %s997_s15, %s69_s30  }
  0x3f   : > { %s98_s16 = sadd.s32 %s97_s27, %s1191_s25  ;;  %p152_p9 = scmp.eq.s32.totalorder %s1547_s24, 11 }
  0x40   : > { %1546 = sst [smem:[#allocation32_spill]] %s1219_s13  ;;  %p157_p13 = scmp.ne.s32.totalorder %s969_s9, %s965_s0 }
  0x41   : > { %s104_s17 = scalar_select %p103_p6, %s1594_s22, %s560_s11 }
  0x42   : > { %s1228_s8 = scalar_select %p139_p3, %s973_s10, %s141_s28  }
  0x43   : > { %s105_s26 = sadd.s32 %s104_s17, %s100_s21  ;;  %p1230_p11 = por %p152_p9, %p151_p8 }
  0x44   : > { %1548 = sst [smem:[#allocation33_spill]] %s1228_s8  ;;  %s107_s30 = ssub.s32 %s98_s16, %s105_s26 }
  0x45   : > { %s1549_s29 = scalar_select %p1230_p11, 1, 0 }
  0x46   : > { %s108_s25 = sor.u32 %s107_s30, %s1197_s4  ;;  %s1550_s5 = sadd.s32 4294967294, %s1017_s20  }
  0x47   : > { %p158_p1 = scmp.eq.s32.totalorder %s1550_s5, 11  ;;  %p111_p2 = scmp.eq.s32.totalorder %s108_s25, 0 }
  0x48   : > { %p1525_p3 = scmp.lt.s32.totalorder %s1017_s20, 12  ;;  %s1552_s21 = sadd.s32 1, %s985_s1 }
  0x49   : > { %p1239_p5 = por %p158_p1, %p157_p13  ;;  %p120_p7 = scmp.ne.s32.totalorder %s985_s1, %s981_s12 }
  0x4a   : > { %s1247_s28 = scalar_select %p111_p2, %s985_s1, %s1552_s21  }
  0x4b   : > { %s1551_s11 = scalar_select %p1239_p5, 1, 0 }
  0x4c   : > { %1553 = sst [smem:[#allocation34_spill]] %s1247_s28  ;;  %p1253_p6 = pnand %p1525_p3, %p1183_p0 }
  0x4d   : > { %s620_s4 = scalar_select %p1183_p0, [#allocation4], [#allocation12] }
  0x4e   : > { %s621_s27 = scalar_select %p1183_p0, %s1013_s19, 0 }
  0x4f   : > { %s178_s16 = sand.u32 1, %s997_s15   ;;  %s1602_s4 = smov (!%p1525_p3, %s620_s4), [#allocation16] }
  0x50   : > { %s1600_s27 = smov (!%p1525_p3, %s621_s27), 0  ;;  %s563_s17 = sshll.u32 %s178_s16, 2 }
  0x51   : > { %s622_s24 = scalar_select %p1183_p0, [#allocation5], [#allocation13] }
  0x52   : > { %p1275_p8 = por %p120_p7, %p77_p10  ;;  %s184_s25 = sld [smem:[%s1602_s4 + %s1600_s27]] }
  0x53   : > { %s1604_s24 = smov (!%p1525_p3, %s622_s24), [#allocation17]  ;;  %s1557_s2 = sld [smem:[#allocation35_spill]] }
  0x54   : > { %s185_s30 = sld [smem:[%s1604_s24 + %s1600_s27]]  ;;  %p1292_p10 = pnand %p1525_p3, %p1275_p8 }
  0x55   : > { %s625_s6 = scalar_select %p1275_p8, [#allocation4], [#allocation14] }
  0x56   : > { %s626_s5 = scalar_select %p1275_p8, %s1013_s19, 0 }
  0x57   : > { %s1606_s6 = smov (!%p1525_p3, %s625_s6), [#allocation18]  ;;  %s182_s24 = scalar_lea.vmem [#allocation6], %s563_s17 }
  0x58   : > { %s1556_s22 = scalar_select %p1292_p10, 1, 0 }
  0x59   : > { %s196_s13 = sshll.u32 %s182_s24, 4  ;;  %s1608_s5 = smov (!%p1525_p3, %s626_s5), 0  ;;  %s1302_s13 = int_to_ptr.vmem [resolvable:$true] %s196_s13 }
  0x5a   : > { %s564_s21 = sadd.s32 4294967295, %s185_s30  ;;  %s179_s17 = scalar_lea.sflag [#allocation7], %s178_s16 }
  0x5b   : > { %p187_p0 = scmp.lt.s32.totalorder %s1009_s18, %s564_s21  ;;  %p807_p1 = pneg %p1253_p6 }
  0x5c   : > { %s810_s28 = scalar_lea.hbm %s1557_s2, 256 }
  0x5d   : > { %s188_s4 = scalar_select %p187_p0, %s1009_s18, %s564_s21 }
  0x5f   : > { %s189_s27 = sadd.s32 %s188_s4, %s184_s25 }
  0x60   : > { %s565_s15 = sshll.u32 %s189_s27, 6 }
  0x61   : > { %s1307_s8 = scalar_lea.hbm %s1557_s2, %s565_s15 }
  0x62   : > { %s805_s24 = scalar_lea.hbm %s1307_s8, 64  ;;  %p811_p0 = scmp.lt.u32.totalorder %s1307_s8, %s1557_s2 }
  0x63   : > { %p806_p13 = scmp.ne.s32.totalorder %s1307_s8, %s805_s24  ;;  %p812_p3 = scmp.lt.u32.totalorder %s810_s28, %s805_s24 }
  0x64   : > { %p814_p9 = scmp.lt.u32.totalorder %s805_s24, %s1307_s8 }
  0x65   : > { %p808_p2 = pnand %p807_p1, %p806_p13  ;;  %p813_p5 = por %p812_p3, %p811_p0 }
  0x67   : > { %p809_p7 = pneg %p808_p2  ;;  %p815_p11 = por %p814_p9, %p813_p5 }
  0x69   : > { %p816_p4 = pnand %p815_p11, %p809_p7 }
  0x6b   : > { %819 = shalt.err (!%p816_p4)
}
  0x6c   : > { %s820_s16 = scalar_lea.vmem %s1302_s13, 64  ;;  %s1021_s27 = smov [#allocation6]  }
  0x6d   : > { %p821_p13 = scmp.ne.s32.totalorder %s1302_s13, %s820_s16  ;;  %s825_s30 = sshll.u32 %s1021_s27, 4  ;;  %s826_s30 = int_to_ptr.vmem [resolvable:$false] %s825_s30 }
  0x6e   : > { %s827_s25 = scalar_lea.vmem %s826_s30, 128  ;;  %p828_p10 = scmp.lt.s32.totalorder %s1302_s13, %s826_s30 }
  0x6f   : > { %p823_p2 = pnand %p821_p13, %p807_p1  ;;  %p829_p3 = scmp.lt.s32.totalorder %s827_s25, %s820_s16 }
  0x71   : > { %p824_p12 = pneg %p823_p2  ;;  %p830_p0 = por %p829_p3, %p828_p10 }
  0x73   : > { %p831_p5 = pnand %p830_p0, %p824_p12 }
  0x75   : > { %834 = shalt.err (!%p831_p5)
}
  0x76   : > { %641 = dma.hbm_to_vmem [thread:$0]  (!%p1253_p6), %s1307_s8, 64, %s1302_s13, %s179_s17  }
  0x77   : > { %s627_s24 = scalar_select %p1275_p8, [#allocation5], [#allocation15] }
  0x78   : > { %p232_p12 = scmp.lt.s32.totalorder %s1017_s20, 13  ;;  %p1558_p4 = scmp.lt.s32.totalorder %s1017_s20, 12 }
  0x79   : > { %s203_s7 = sand.u32 1, %s985_s1   ;;  %p1559_p11 = scmp.ge.s32.totalorder %s1017_s20, 1 }
  0x7a   : > { %s1610_s24 = smov (!%p1558_p4, %s627_s24), [#allocation19]  ;;  %s566_s15 = sshll.u32 %s203_s7, 6 }
  0x7b   : > { %p1343_p10 = pnand %p1559_p11, %p232_p12  ;;  %s210_s28 = sld [smem:[%s1610_s24 + %s1608_s5]] }
  0x7c   : > { %s209_s4 = sld [smem:[%s1606_s6 + %s1608_s5]]  ;;  %s207_s27 = scalar_lea.vmem [#allocation9], %s566_s15 }
  0x7d   : > { %s224_s13 = sshll.u32 %s207_s27, 4  ;;  %s569_s26 = sshll.u32 %s1013_s19, 6  ;;  %s1353_s13 = int_to_ptr.vmem [resolvable:$true] %s224_s13 }
  0x7e   : > { %s1360_s6 = scalar_lea.sflag [#allocation10], %s203_s7  ;;  %p1561_p8 = scmp.ne.s32.totalorder %s1556_s22, 0 }
  0x7f   : > { %s840_s10 = scalar_lea.hbm %s1515_s3, 24576 }
  0x80   : > { %p837_p1 = pneg %p1561_p8 }
  0x81   : > { %s567_s16 = sadd.s32 4294967295, %s210_s28 }
  0x82   : > { %p212_p9 = scmp.lt.s32.totalorder %s1009_s18, %s567_s16 }
  0x84   : > { %s213_s8 = scalar_select %p212_p9, %s1009_s18, %s567_s16 }
  0x86   : > { %s214_s17 = sadd.s32 %s213_s8, %s209_s4 }
  0x87   : > { %s568_s30 = sshll.u32 %s214_s17, 4 }
  0x88   : > { %s221_s25 = sadd.s32 %s569_s26, %s568_s30 }
  0x89   : > { %s570_s2 = sshll.u32 %s221_s25, 6 }
  0x8a   : > { %s1358_s24 = scalar_lea.hbm %s1515_s3, %s570_s2 }
  0x8b   : > { %s835_s5 = scalar_lea.hbm %s1358_s24, 1024  ;;  %p841_p2 = scmp.lt.u32.totalorder %s1358_s24, %s1515_s3 }
  0x8c   : > { %p836_p6 = scmp.ne.s32.totalorder %s1358_s24, %s835_s5  ;;  %p842_p3 = scmp.lt.u32.totalorder %s840_s10, %s835_s5 }
  0x8d   : > { %p844_p5 = scmp.lt.u32.totalorder %s835_s5, %s1358_s24 }
  0x8e   : > { %p838_p7 = pnand %p837_p1, %p836_p6  ;;  %p843_p0 = por %p842_p3, %p841_p2 }
  0x90   : > { %p839_p13 = pneg %p838_p7  ;;  %p845_p12 = por %p844_p5, %p843_p0 }
  0x92   : > { %p846_p4 = pnand %p845_p12, %p839_p13 }
  0x94   : > { %849 = shalt.err (!%p846_p4)
}
  0x95   : > { %s850_s7 = scalar_lea.vmem %s1353_s13, 1024  ;;  %s1022_s4 = smov [#allocation9]  }
  0x96   : > { %p851_p11 = scmp.ne.s32.totalorder %s1353_s13, %s850_s7  ;;  %s855_s16 = sshll.u32 %s1022_s4, 4  ;;  %s856_s16 = int_to_ptr.vmem [resolvable:$false] %s855_s16 }
  0x97   : > { %s857_s27 = scalar_lea.vmem %s856_s16, 2048  ;;  %p858_p7 = scmp.lt.s32.totalorder %s1353_s13, %s856_s16 }
  0x98   : > { %p853_p9 = pnand %p851_p11, %p837_p1  ;;  %p859_p2 = scmp.lt.s32.totalorder %s857_s27, %s850_s7 }
  0x9a   : > { %p854_p6 = pneg %p853_p9  ;;  %p860_p3 = por %p859_p2, %p858_p7 }
  0x9c   : > { %p861_p0 = pnand %p860_p3, %p854_p6 }
  0x9e   : > { %864 = shalt.err (!%p861_p0)
}
  0x9f   : > { %s1023_s8 = smov 64   ;;  %s1024_s26 = smov 4  }
  0xa0   : > { %648 = dma.hbm_to_vmem [thread:$0]  (!%p1561_p8), %s1358_s24, 1024, %s1353_s13, %s1360_s6, %s1023_s8, %s1023_s8, %s1024_s26  }
  0xa1   : > { %236 = sbr.rel (%p1343_p10) target bundleno = 494 (0x1ee), region = 28  ;;  %s1562_s17 = sld [smem:[#allocation31_spill]] (!%p1343_p10) }
  0xa2   : > { %s238_s30 = sand.u32 (!%p1343_p10), 1, %s993_s14  }
  0xa3   : > { %s1391_s25 = sshll.u32 (!%p1343_p10), %s238_s30, 2  ;;  %s239_s5 = scalar_lea.sflag (!%p1343_p10), [#allocation7], %s238_s30 }
  0xa4   : > { %s242_s28 = scalar_lea.vmem (!%p1343_p10), [#allocation6], %s1391_s25 }
  0xa7   : > { %p1563_p1 = scmp.ne.s32.totalorder (!%p1343_p10), %s1562_s17, 0 }
  0xa9   : > { %952 = dma.done.wait (%p1563_p1), %s239_s5, 64  }
  0xaa   : > { %954 = vsyncadd (%p1563_p1), %s239_s5, 4294967232  ;;  %s247_s22 = sand.u32 1, %s981_s12   ;;  %p1564_p10 = scmp.ne.s32.totalorder %s1545_s23, 0 }
  0xab   : > { %s573_s13 = sshll.u32 %s247_s22, 6  ;;  %s248_s24 = scalar_lea.sflag [#allocation10], %s247_s22 }
  0xac   : > { %s1399_s21 = scalar_lea.vmem [#allocation9], %s573_s13 }
  0xad   : > { %956 = dma.done.wait (%p1564_p10), %s248_s24, 1024  }
  0xae   : > { %958 = vsyncadd (%p1564_p10), %s248_s24, 4294966272  ;;  %s274_s6 = sand.u32 1, %s969_s9   ;;  %s1565_s2 = sld [smem:[#allocation27_spill]] }
  0xaf   : > { %s574_s15 = sshll.u32 %s274_s6, 3 }
  0xb0   : > { %s1408_s10 = scalar_lea.vmem [#allocation11], %s574_s15 }
  0xb4   : > { %p575_p8 = scmp.ne.s32.totalorder %s1565_s2, 0 }
  0xb5   : > { %vm298_vm0 = vcmask (!%p575_p8), 523264   ;;  %v1025_v0 = vmov (!%p575_p8), 0.0  }
  0xb6   : > { %297 = sbr.rel (%p575_p8) target bundleno = 189 (0xbd), region = 40  ;;  %299 = vst.msk [vmem:[#allocation2] sm:$0xff] (!%p575_p8), %vm298_vm0, %v1025_v0 }
  0xbd PF: > { %s1566_s1 = sld [smem:[#allocation28_spill]]  ;;  %s1567_s4 = sld [smem:[#allocation27_spill]] }
  0xc3   : > { %s300_s7 = sld [smem:[#allocation5 + %s1566_s1]] }
  0xc9   : > { %p576_p13 = scmp.ge.s32.totalorder %s1567_s4, %s300_s7 }
  0xca   : > { %v777_v1 = vld [vmem:[%s1399_s21] sm:$0xff] (!%p576_p13)   ;;  %v1026_v2 = vmov (!%p576_p13), 0.0   ;;  %v778_v3 = vld [vmem:[%s1399_s21 + $0x8] sm:$0xff] (!%p576_p13)   ;;  %vm1027_vm1 = vmmov (!%p576_p13), 0   ;;  %v779_v4 = vld [vmem:[%s1399_s21 + $0x10] sm:$0xff] (!%p576_p13)   ;;  %vm412_vm2 = vcmask (!%p576_p13), 523264  }
  0xcb   : > { %304 = sbr.rel (%p576_p13) target bundleno = 450 (0x1c2), region = 44  ;;  %600 = vmatprep.subr.bf16.mxu0 (!%p576_p13), %v1026_v2  ;;  %616 = vmatprep.mubr.msk.bf16.mxu0 (!%p576_p13), %vm1027_vm1, %v1026_v2  ;;  %v780_v5 = vld [vmem:[%s1399_s21 + $0x18] sm:$0xff] (!%p576_p13)   ;;  %v781_v6 = vld [vmem:[%s1399_s21 + $0x20] sm:$0xff] (!%p576_p13)   ;;  %v782_v7 = vld [vmem:[%s1399_s21 + $0x28] sm:$0xff] (!%p576_p13)  }
  0xcc   : > { %601 = vmatpush3.bf16.msra.mxu0 (!%p576_p13), %v777_v1  ;;  %v783_v8 = vld [vmem:[%s1399_s21 + $0x30] sm:$0xff] (!%p576_p13)   ;;  %v784_v9 = vld [vmem:[%s1399_s21 + $0x38] sm:$0xff] (!%p576_p13)  }
  0xcd   : > { %602 = vmatprep.subr.bf16.mxu0 (!%p576_p13), %v1026_v2  ;;  %v306_v10 = vld [vmem:[%s242_s28] sm:$0xf] (!%p576_p13)  ;;  %v305_v11 = vld [vmem:[#allocation2] sm:$0xff] (!%p576_p13) }
  0xd0   : > { %603 = vmatpush3.bf16.msra.mxu0 (!%p576_p13), %v778_v3 }
  0xd1   : > { %604 = vmatprep.subr.bf16.mxu0 (!%p576_p13), %v1026_v2 }
  0xd4   : > { %605 = vmatpush3.bf16.msra.mxu0 %v779_v4 }
  0xd5   : > { %606 = vmatprep.subr.bf16.mxu0 %v1026_v2 }
  0xd8   : > { %607 = vmatpush3.bf16.msra.mxu0 %v780_v5 }
  0xd9   : > { %608 = vmatprep.subr.bf16.mxu0 %v1026_v2 }
  0xdc   : > { %609 = vmatpush3.bf16.msra.mxu0 %v781_v6 }
  0xdd   : > { %610 = vmatprep.subr.bf16.mxu0 %v1026_v2 }
  0xe0   : > { %611 = vmatpush3.bf16.msra.mxu0 %v782_v7 }
  0xe1   : > { %612 = vmatprep.subr.bf16.mxu0 %v1026_v2 }
  0xe4   : > { %613 = vmatpush3.bf16.msra.mxu0 %v783_v8 }
  0xe5   : > { %614 = vmatprep.subr.bf16.mxu0 %v1026_v2 }
  0xe8   : > { %615 = vmatpush3.bf16.msra.mxu0 %v784_v9 }
  0xeb   : > { %617 = vmatmul.mubr.bf16.vlgmr.msra.gmra.mrb[0].mxu0 %v306_v10 }
 0x1be   : > { %v405_v12 = vpop.f32.mrb[0].mxu0 }
 0x1bf   : > { %v411_v13 = vadd.f32 %v405_v12, %v305_v11  ;;  %v618_v14 = vpop.f32.mrb[1].mxu0 }
 0x1c0   : > { %v408_v15 = vpop.f32.mrb[2].mxu0 }
 0x1c1   : > { %413 = vst.msk [vmem:[#allocation2] sm:$0xff] %vm412_vm2, %v411_v13  ;;  %v619_v16 = vpop.f32.mrb[3].mxu0 }
 0x1c2 PF: > { %s1568_s23 = sld [smem:[#allocation27_spill]] }
 0x1c8   : > { %p585_p5 = scmp.ne.s32.totalorder %s1568_s23, 1 }
 0x1c9   : > { %v418_v17 = vld [vmem:[#allocation2] sm:$0xf] (!%p585_p5)  ;;  %vm419_vm3 = vcmask (!%p585_p5), 519168   ;;  %v421_v18 = vld [vmem:[#allocation2 + $0x4] sm:$0xf] (!%p585_p5) }
 0x1ca   : > { %417 = sbr.rel (%p585_p5) target bundleno = 465 (0x1d1), region = 48  ;;  %420 = vst.msk [vmem:[%s1408_s10] sm:$0xf] (!%p585_p5), %vm419_vm3, %v418_v17  ;;  %586 = vst.msk [vmem:[%s1408_s10 + $0x4] sm:$0xf] (!%p585_p5), %vm419_vm3, %v421_v18 }
 0x1d1 PF: > { %s1569_s16 = sld [smem:[#allocation28_spill]]  ;;  %s1570_s17 = sld [smem:[#allocation36_spill]] }
 0x1d2   : > { %s438_s5 = sshll.u32 %s1408_s10, 4  ;;  %s1437_s28 = scalar_lea.sflag [#allocation8], %s274_s6  ;;  %s1433_s5 = int_to_ptr.vmem [resolvable:$true] %s438_s5 }
 0x1d3   : > { %s865_s22 = scalar_lea.vmem %s1433_s5, 128  ;;  %p1572_p4 = scmp.ne.s32.totalorder %s1549_s29, 0 }
 0x1d4   : > { %p866_p12 = scmp.ne.s32.totalorder %s1433_s5, %s865_s22  ;;  %s1028_s13 = smov [#allocation11]  }
 0x1d5   : > { %s869_s24 = sshll.u32 %s1028_s13, 4  ;;  %s870_s24 = int_to_ptr.vmem [resolvable:$false] %s869_s24 }
 0x1d6   : > { %p867_p11 = pnand %p866_p12, %p1572_p4  ;;  %s871_s21 = scalar_lea.vmem %s870_s24, 256 }
 0x1d7   : > { %s588_s27 = sshll.u32 %s1569_s16, 6  ;;  %s1571_s30 = smov %s1570_s17 }
 0x1d8   : > { %s1430_s25 = scalar_lea.hbm %s1570_s17, %s588_s27  ;;  %p868_p9 = pneg %p867_p11 }
 0x1d9   : > { %p872_p6 = scmp.lt.s32.totalorder %s1433_s5, %s870_s24  ;;  %p873_p7 = scmp.lt.s32.totalorder %s871_s21, %s865_s22 }
 0x1db   : > { %p874_p2 = por %p873_p7, %p872_p6 }
 0x1dd   : > { %p875_p3 = pnand %p874_p2, %p868_p9 }
 0x1df   : > { %878 = shalt.err (!%p875_p3)
}
 0x1e0   : > { %s879_s6 = scalar_lea.hbm %s1430_s25, 128  ;;  %s883_s2 = scalar_lea.hbm %s1571_s30, 768 }
 0x1e1   : > { %p880_p0 = scmp.ne.s32.totalorder %s1430_s25, %s879_s6  ;;  %p884_p8 = scmp.lt.u32.totalorder %s1430_s25, %s1571_s30 }
 0x1e2   : > { %p885_p13 = scmp.lt.u32.totalorder %s883_s2, %s879_s6  ;;  %p887_p12 = scmp.lt.u32.totalorder %s879_s6, %s1430_s25 }
 0x1e3   : > { %p881_p1 = pnand %p880_p0, %p1572_p4 }
 0x1e4   : > { %p886_p5 = por %p885_p13, %p884_p8 }
 0x1e5   : > { %p882_p10 = pneg %p881_p1 }
 0x1e6   : > { %p888_p11 = por %p887_p12, %p886_p5 }
 0x1e8   : > { %p889_p9 = pnand %p888_p11, %p882_p10 }
 0x1ea   : > { %892 = shalt.err (!%p889_p9)
}
 0x1eb   : > { %s1029_s4 = smov 64   ;;  %s1030_s23 = smov 384  }
 0x1ec   : > { %s1031_s16 = smov 4  }
 0x1ed   : > { %632 = dma.vmem_to_hbm [thread:$0]  (%p1572_p4), %s1433_s5, 128, %s1430_s25, %s1437_s28, %s1029_s4, %s1030_s23, %s1031_s16  }
 0x1ee PF: > { %p654_p6 = scmp.ge.s32.totalorder %s1017_s20, 2  ;;  %s453_s27 = sand.u32 1, %s965_s0  }
 0x1ef   : > { %p1573_p7 = scmp.ne.s32.totalorder %s1551_s11, 0  ;;  %s454_s8 = scalar_lea.sflag [#allocation8], %s453_s27 }
 0x1f1   : > { %p650_p2 = pnand %p654_p6, %p1573_p7 }
 0x1f3   : > { %960 = dma.done.wait (!%p650_p2), %s454_s8, 128  }
 0x1f4   : > { %962 = vsyncadd (!%p650_p2), %s454_s8, 4294967168  ;;  %s29_s20 = sadd.s32 1, %s1017_s20   ;;  %s1575_s29 = sld [smem:[#allocation24_spill]] }
 0x1f5   : > { %p1466_p3 = scmp.ge.s32.totalorder %s29_s20, 14   ;;  %s1576_s10 = sld [smem:[#allocation33_spill]] }
 0x1f6   : > { %s1577_s17 = sld [smem:[#allocation25_spill]]  ;;  %s1578_s1 = sld [smem:[#allocation34_spill]] }
 0x1f7   : > { %s1579_s25 = sld [smem:[#allocation26_spill]]  ;;  %s1580_s15 = sld [smem:[#allocation32_spill]] }
 0x1f8   : > { %s1581_s5 = sld [smem:[#allocation29_spill]]  ;;  %s1582_s28 = sld [smem:[#allocation30_spill]] }
 0x1f9   : > { %s1583_s0 = smov %s969_s9  ;;  %s1585_s11 = smov %s981_s12 }
 0x1fa   : > { %s1584_s9 = smov %s1575_s29  ;;  %s1587_s13 = smov %s993_s14 }
 0x1fb   : > { %s1589_s16 = smov %s1009_s18  ;;  %28 = sbr.rel (!%p1466_p3) target bundleno = 32 (0x20), region = 99 }
 0x1fc   : > { %s1586_s12 = smov %s1577_s17  ;;  %s1590_s17 = smov %s1013_s19 }
 0x1fd   : > { %s1588_s14 = smov %s1579_s25 }
 0x1fe   : > { %s1591_s18 = smov %s1581_s5  ;;  %s1592_s19 = smov %s1582_s28 }
 0x202   :  { %459 = vsyncpa [#allocation7], 1 }
 0x203   :  { %461 = vsyncpa [#allocation7 + $0x1], 1 }
 0x204   :  { %462 = vsyncpa [#allocation10], 1 }
 0x205   :  { %464 = vsyncpa [#allocation10 + $0x1], 1 }
 0x206   :  { %465 = vsyncpa [#allocation8], 1 }
 0x207   :  { %467 = vsyncpa [#allocation8 + $0x1], 1 }

</bundles_post_ra>
